<compile_context>
chip_gen: v7x
topology: tpu7x:2x2x1
jax: 0.10.0
libtpu: 0.0.40
codegen_flags: <defaults>
</compile_context>

<pallas_src>
import functools

import jax
import jax.numpy as jnp
from jax import lax
from jax.experimental import pallas as pl
from jax.experimental.pallas import tpu as pltpu

DIM_X = 12     # state dimension, matches KalmanForecaster(dim_x=12)
B_TILE = 128   # batch elements per lane tile


def _kalman_kernel(z_ref, a_ref, b_ref, g_ref, x0_ref, out_ref):
    """One grid step == one batch tile of 128 lanes.

    z_ref   : (L, M, B_tile)       observations, lane-dense over batch
    a_ref   : (L, N, N)            per-step state transition A_t
    b_ref   : (L, N, M)            per-step observation-injection B_t
    g_ref   : (pred_len*M, N)      forecast projection G = stack_k(H F^{k+1})
    x0_ref  : (N, B_tile)          initial state mean (broadcast over batch)
    out_ref : (pred_len*M, B_tile) forecast (wrapper reshapes/transposes back)
    """
    L = z_ref.shape[0]

    def step(t, x):
        A = a_ref[t]          # (N, N)
        Bm = b_ref[t]         # (N, M)
        z = z_ref[t]          # (M, B_tile)
        return (jnp.dot(A, x, preferred_element_type=jnp.float32)
                + jnp.dot(Bm, z, preferred_element_type=jnp.float32))

    unroll = True if L <= 64 else 8
    x = lax.fori_loop(0, L, step, x0_ref[...], unroll=unroll)

    # Whole forecast in one matmul + one lane-dense store.
    out_ref[...] = jnp.dot(g_ref[...], x, preferred_element_type=jnp.float32)


def _precompute_affine(F, H, Q, R_diag, P0, L):
    """Observation-independent part of the filter: per-step (A_t, B_t) such that
    x_t = A_t x_{t-1} + B_t z_t, exactly matching predict + sequential scalar
    updates with diagonal R."""
    N = F.shape[0]
    M = H.shape[0]
    I = jnp.eye(N, dtype=jnp.float32)

    def step(P, _):
        # predict
        P = F @ P @ F.T + Q
        # sequential scalar updates (R diagonal)
        Tprod = I
        cols = []
        for m in range(M):
            h = H[m:m + 1, :]                       # (1, N)
            Ph = P @ h.T                            # (N, 1)
            s = (h @ Ph)[0, 0] + R_diag[m]
            K = Ph / s                              # (N, 1)
            T = I - K @ h                           # (N, N)
            cols = [T @ c for c in cols]            # later channels hit earlier gains
            cols.append(K)
            Tprod = T @ Tprod
            P = P - K @ (h @ P)
        A_t = Tprod @ F                             # (N, N)
        B_t = jnp.concatenate(cols, axis=1)         # (N, M)
        return P, (A_t, B_t)

    _, (A_seq, B_seq) = lax.scan(step, P0, None, length=L)
    return A_seq, B_seq


def _build_forecast_projection(F, H, pred_len):
    """G = concat_k(H @ F^{k+1}), shape (pred_len*M, N)."""
    rows = []
    Fk = F
    for _ in range(pred_len):
        rows.append(H @ Fk)
        Fk = F @ Fk
    return jnp.concatenate(rows, axis=0)


@functools.partial(jax.jit, static_argnames=("pred_len",))
def kalman_forecast(x_enc, F, H, Q, R_diag, x0, P0, *, pred_len):
    """Pallas-backed equivalent of Model.forecast: (B, L, M) -> (B, pred_len, M)."""
    B, L, M = x_enc.shape
    N = F.shape[0]

    F = F.astype(jnp.float32)
    H = H.astype(jnp.float32)
    Q = Q.astype(jnp.float32)
    R_diag = R_diag.astype(jnp.float32)
    P0 = P0.astype(jnp.float32)
    x0 = x0.astype(jnp.float32)

    # Hoisted, batch-independent precompute (plain JAX, runs once per call).
    A_seq, B_seq = _precompute_affine(F, H, Q, R_diag, P0, L)   # (L,N,N), (L,N,M)
    G = _build_forecast_projection(F, H, pred_len)              # (pred_len*M, N)

    # Batch on lanes: (B, L, M) -> (L, M, B_pad), pad B up to a multiple of 128.
    n_tiles = pl.cdiv(B, B_TILE)
    B_pad = n_tiles * B_TILE
    z = jnp.transpose(x_enc.astype(jnp.float32), (1, 2, 0))      # (L, M, B)
    z = jnp.pad(z, ((0, 0), (0, 0), (0, B_pad - B)))             # (L, M, B_pad)
    x0_b = jnp.broadcast_to(x0.reshape(N, 1), (N, B_pad))        # (N, B_pad)

    PM = pred_len * M
    out = pl.pallas_call(
        _kalman_kernel,
        out_shape=jax.ShapeDtypeStruct((PM, B_pad), jnp.float32),
        grid=(n_tiles,),
        in_specs=[
            pl.BlockSpec((L, M, B_TILE), lambda b: (0, 0, b)),   # observations
            pl.BlockSpec((L, N, N), lambda b: (0, 0, 0)),        # A_t schedule
            pl.BlockSpec((L, N, M), lambda b: (0, 0, 0)),        # B_t schedule
            pl.BlockSpec((PM, N), lambda b: (0, 0)),             # forecast projection
            pl.BlockSpec((N, B_TILE), lambda b: (0, b)),         # x0 (broadcast)
        ],
        out_specs=pl.BlockSpec((PM, B_TILE), lambda b: (0, b)),
        compiler_params=pltpu.CompilerParams(
            dimension_semantics=("parallel",)),
    )(z, A_seq, B_seq, G, x0_b)

    # (pred_len*M, B_pad) -> (B, pred_len, M)
    out = out.reshape(pred_len, M, B_pad)[:, :, :B]
    return jnp.transpose(out, (2, 0, 1))


def model_forward(params, x_enc, x_mark_enc, x_dec, x_mark_dec, *,
                  pred_len, task_name="long_term_forecast", mask=None):
    """Mirrors Model.forward: only x_enc and pred_len feed the Kalman backbone."""
    if task_name in ("long_term_forecast", "short_term_forecast"):
        dec_out = kalman_forecast(
            x_enc, params["F"], params["H"], params["Q"], params["R_diag"],
            params["x0"], params["P0"], pred_len=pred_len)
        return dec_out[:, -pred_len:, :]
    raise NotImplementedError(task_name)


def _reference_forecast(x_enc, F, H, Q, R_diag, x0, P0, pred_len):
    """Pure-JAX reference: explicit Kalman filter with sequential scalar updates."""
    B, L, M = x_enc.shape
    N = F.shape[0]
    outs = []
    for b in range(B):
        x = x0.reshape(N, 1)
        P = P0
        for t in range(L):
            x = F @ x
            P = F @ P @ F.T + Q
            z = x_enc[b, t]
            for m in range(M):
                h = H[m:m + 1, :]                    # (1, N)
                Ph = P @ h.T                         # (N, 1)
                s = (h @ Ph)[0, 0] + R_diag[m]
                y = z[m] - (h @ x)[0, 0]
                K = Ph / s
                x = x + K * y
                P = P - K @ (h @ P)
        rows = []
        for _ in range(pred_len):
            x = F @ x
            rows.append((H @ x)[:, 0])
        outs.append(jnp.stack(rows, axis=0))
    return jnp.stack(outs, axis=0)


if __name__ == "__main__":
    # Small shapes consistent with the module's forward signature.
    B, L, M, PRED = 2, 16, 4, 8
    N = DIM_X

    key = jax.random.PRNGKey(0)
    k_x, k_f, k_h = jax.random.split(key, 3)

    x_enc = jax.random.normal(k_x, (B, L, M), dtype=jnp.float32)
    x_mark_enc = jnp.zeros((B, L, 4), jnp.float32)
    x_dec = jnp.zeros((B, PRED, M), jnp.float32)
    x_mark_dec = jnp.zeros((B, PRED, 4), jnp.float32)

    # Deterministic, stable Kalman parameters (stand-in for backbone.fit()).
    params = {
        "F": 0.9 * jnp.eye(N, dtype=jnp.float32)
             + 0.05 * jax.random.normal(k_f, (N, N), dtype=jnp.float32),
        "H": 0.3 * jax.random.normal(k_h, (M, N), dtype=jnp.float32),
        "Q": 0.01 * jnp.eye(N, dtype=jnp.float32),
        "R_diag": 0.1 * jnp.ones((M,), dtype=jnp.float32),
        "x0": jnp.zeros((N,), dtype=jnp.float32),
        "P0": jnp.eye(N, dtype=jnp.float32),
    }

    out = model_forward(params, x_enc, x_mark_enc, x_dec, x_mark_dec,
                        pred_len=PRED)
    out = jax.block_until_ready(out)
    assert out.shape == (B, PRED, M), out.shape

    ref = _reference_forecast(x_enc, params["F"], params["H"], params["Q"],
                              params["R_diag"], params["x0"], params["P0"], PRED)
    if not jnp.allclose(out, ref, atol=1e-2, rtol=1e-2):
        max_err = float(jnp.max(jnp.abs(out - ref)))
        raise AssertionError(f"Pallas kernel mismatch vs reference: {max_err}")

    print("KERNEL_OK")
</pallas_src>

<mosaic_0001>
module attributes {stable_mosaic.version = 11 : i64} {
  func.func @_kalman_kernel(%arg0: i32, %arg1: memref<16x4x128xf32, #tpu.memory_space<vmem>>, %arg2: memref<16x12x12xf32, #tpu.memory_space<vmem>>, %arg3: memref<16x12x4xf32, #tpu.memory_space<vmem>>, %arg4: memref<32x12xf32, #tpu.memory_space<vmem>>, %arg5: memref<12x128xf32, #tpu.memory_space<vmem>>, %arg6: memref<32x128xf32, #tpu.memory_space<vmem>>) attributes {dimension_semantics = [#tpu.dimension_semantics<parallel>], iteration_bounds = array<i64: 1>, scalar_prefetch = 0 : i64, scratch_operands = 0 : i64, tpu.core_type = #tpu.core_type<tc>, window_params = [{transform_indices = @transform_0, window_bounds = array<i64: 16, 4, 128>}, {pipeline_mode = #tpu.pipeline_mode<synchronous>, transform_indices = @transform_1, window_bounds = array<i64: 16, 12, 12>}, {pipeline_mode = #tpu.pipeline_mode<synchronous>, transform_indices = @transform_2, window_bounds = array<i64: 16, 12, 4>}, {pipeline_mode = #tpu.pipeline_mode<synchronous>, transform_indices = @transform_3, window_bounds = array<i64: 32, 12>}, {transform_indices = @transform_4, window_bounds = array<i64: 12, 128>}, {transform_indices = @transform_5, window_bounds = array<i64: 32, 128>}]} {
    %c0 = arith.constant 0 : index
    %c0_0 = arith.constant 0 : index
    %0 = vector.load %arg5[%c0, %c0_0] : memref<12x128xf32, #tpu.memory_space<vmem>>, vector<12x128xf32>
    %c0_i32 = arith.constant 0 : i32
    %1 = arith.index_cast %c0_i32 : i32 to index
    %c0_1 = arith.constant 0 : index
    %c0_2 = arith.constant 0 : index
    %2 = vector.load %arg2[%1, %c0_1, %c0_2] : memref<16x12x12xf32, #tpu.memory_space<vmem>>, vector<1x12x12xf32>
    %3 = vector.shape_cast %2 : vector<1x12x12xf32> to vector<12x12xf32>
    %4 = arith.index_cast %c0_i32 : i32 to index
    %c0_3 = arith.constant 0 : index
    %c0_4 = arith.constant 0 : index
    %5 = vector.load %arg3[%4, %c0_3, %c0_4] : memref<16x12x4xf32, #tpu.memory_space<vmem>>, vector<1x12x4xf32>
    %6 = vector.shape_cast %5 : vector<1x12x4xf32> to vector<12x4xf32>
    %7 = arith.index_cast %c0_i32 : i32 to index
    %c0_5 = arith.constant 0 : index
    %c0_6 = arith.constant 0 : index
    %8 = vector.load %arg1[%7, %c0_5, %c0_6] : memref<16x4x128xf32, #tpu.memory_space<vmem>>, vector<1x4x128xf32>
    %9 = vector.shape_cast %8 : vector<1x4x128xf32> to vector<4x128xf32>
    %cst = arith.constant dense<0.000000e+00> : vector<12x128xf32>
    %10 = tpu.matmul %3, %0, %cst {dimension_numbers = #tpu.dot_dimension_numbers<[1], [0], [0], [1], [0, 0, 1, 1], [], []>} : vector<12x12xf32>, vector<12x128xf32>, vector<12x128xf32> -> vector<12x128xf32>
    %cst_7 = arith.constant dense<0.000000e+00> : vector<12x128xf32>
    %11 = tpu.matmul %6, %9, %cst_7 {dimension_numbers = #tpu.dot_dimension_numbers<[1], [0], [0], [1], [0, 0, 1, 1], [], []>} : vector<12x4xf32>, vector<4x128xf32>, vector<12x128xf32> -> vector<12x128xf32>
    %12 = arith.addf %10, %11 : vector<12x128xf32>
    %c1_i32 = arith.constant 1 : i32
    %13 = arith.index_cast %c1_i32 : i32 to index
    %c0_8 = arith.constant 0 : index
    %c0_9 = arith.constant 0 : index
    %14 = vector.load %arg2[%13, %c0_8, %c0_9] : memref<16x12x12xf32, #tpu.memory_space<vmem>>, vector<1x12x12xf32>
    %15 = vector.shape_cast %14 : vector<1x12x12xf32> to vector<12x12xf32>
    %16 = arith.index_cast %c1_i32 : i32 to index
    %c0_10 = arith.constant 0 : index
    %c0_11 = arith.constant 0 : index
    %17 = vector.load %arg3[%16, %c0_10, %c0_11] : memref<16x12x4xf32, #tpu.memory_space<vmem>>, vector<1x12x4xf32>
    %18 = vector.shape_cast %17 : vector<1x12x4xf32> to vector<12x4xf32>
    %19 = arith.index_cast %c1_i32 : i32 to index
    %c0_12 = arith.constant 0 : index
    %c0_13 = arith.constant 0 : index
    %20 = vector.load %arg1[%19, %c0_12, %c0_13] : memref<16x4x128xf32, #tpu.memory_space<vmem>>, vector<1x4x128xf32>
    %21 = vector.shape_cast %20 : vector<1x4x128xf32> to vector<4x128xf32>
    %cst_14 = arith.constant dense<0.000000e+00> : vector<12x128xf32>
    %22 = tpu.matmul %15, %12, %cst_14 {dimension_numbers = #tpu.dot_dimension_numbers<[1], [0], [0], [1], [0, 0, 1, 1], [], []>} : vector<12x12xf32>, vector<12x128xf32>, vector<12x128xf32> -> vector<12x128xf32>
    %cst_15 = arith.constant dense<0.000000e+00> : vector<12x128xf32>
    %23 = tpu.matmul %18, %21, %cst_15 {dimension_numbers = #tpu.dot_dimension_numbers<[1], [0], [0], [1], [0, 0, 1, 1], [], []>} : vector<12x4xf32>, vector<4x128xf32>, vector<12x128xf32> -> vector<12x128xf32>
    %24 = arith.addf %22, %23 : vector<12x128xf32>
    %c2_i32 = arith.constant 2 : i32
    %25 = arith.index_cast %c2_i32 : i32 to index
    %c0_16 = arith.constant 0 : index
    %c0_17 = arith.constant 0 : index
    %26 = vector.load %arg2[%25, %c0_16, %c0_17] : memref<16x12x12xf32, #tpu.memory_space<vmem>>, vector<1x12x12xf32>
    %27 = vector.shape_cast %26 : vector<1x12x12xf32> to vector<12x12xf32>
    %28 = arith.index_cast %c2_i32 : i32 to index
    %c0_18 = arith.constant 0 : index
    %c0_19 = arith.constant 0 : index
    %29 = vector.load %arg3[%28, %c0_18, %c0_19] : memref<16x12x4xf32, #tpu.memory_space<vmem>>, vector<1x12x4xf32>
    %30 = vector.shape_cast %29 : vector<1x12x4xf32> to vector<12x4xf32>
    %31 = arith.index_cast %c2_i32 : i32 to index
    %c0_20 = arith.constant 0 : index
    %c0_21 = arith.constant 0 : index
    %32 = vector.load %arg1[%31, %c0_20, %c0_21] : memref<16x4x128xf32, #tpu.memory_space<vmem>>, vector<1x4x128xf32>
    %33 = vector.shape_cast %32 : vector<1x4x128xf32> to vector<4x128xf32>
    %cst_22 = arith.constant dense<0.000000e+00> : vector<12x128xf32>
    %34 = tpu.matmul %27, %24, %cst_22 {dimension_numbers = #tpu.dot_dimension_numbers<[1], [0], [0], [1], [0, 0, 1, 1], [], []>} : vector<12x12xf32>, vector<12x128xf32>, vector<12x128xf32> -> vector<12x128xf32>
    %cst_23 = arith.constant dense<0.000000e+00> : vector<12x128xf32>
    %35 = tpu.matmul %30, %33, %cst_23 {dimension_numbers = #tpu.dot_dimension_numbers<[1], [0], [0], [1], [0, 0, 1, 1], [], []>} : vector<12x4xf32>, vector<4x128xf32>, vector<12x128xf32> -> vector<12x128xf32>
    %36 = arith.addf %34, %35 : vector<12x128xf32>
    %c3_i32 = arith.constant 3 : i32
    %37 = arith.index_cast %c3_i32 : i32 to index
    %c0_24 = arith.constant 0 : index
    %c0_25 = arith.constant 0 : index
    %38 = vector.load %arg2[%37, %c0_24, %c0_25] : memref<16x12x12xf32, #tpu.memory_space<vmem>>, vector<1x12x12xf32>
    %39 = vector.shape_cast %38 : vector<1x12x12xf32> to vector<12x12xf32>
    %40 = arith.index_cast %c3_i32 : i32 to index
    %c0_26 = arith.constant 0 : index
    %c0_27 = arith.constant 0 : index
    %41 = vector.load %arg3[%40, %c0_26, %c0_27] : memref<16x12x4xf32, #tpu.memory_space<vmem>>, vector<1x12x4xf32>
    %42 = vector.shape_cast %41 : vector<1x12x4xf32> to vector<12x4xf32>
    %43 = arith.index_cast %c3_i32 : i32 to index
    %c0_28 = arith.constant 0 : index
    %c0_29 = arith.constant 0 : index
    %44 = vector.load %arg1[%43, %c0_28, %c0_29] : memref<16x4x128xf32, #tpu.memory_space<vmem>>, vector<1x4x128xf32>
    %45 = vector.shape_cast %44 : vector<1x4x128xf32> to vector<4x128xf32>
    %cst_30 = arith.constant dense<0.000000e+00> : vector<12x128xf32>
    %46 = tpu.matmul %39, %36, %cst_30 {dimension_numbers = #tpu.dot_dimension_numbers<[1], [0], [0], [1], [0, 0, 1, 1], [], []>} : vector<12x12xf32>, vector<12x128xf32>, vector<12x128xf32> -> vector<12x128xf32>
    %cst_31 = arith.constant dense<0.000000e+00> : vector<12x128xf32>
    %47 = tpu.matmul %42, %45, %cst_31 {dimension_numbers = #tpu.dot_dimension_numbers<[1], [0], [0], [1], [0, 0, 1, 1], [], []>} : vector<12x4xf32>, vector<4x128xf32>, vector<12x128xf32> -> vector<12x128xf32>
    %48 = arith.addf %46, %47 : vector<12x128xf32>
    %c4_i32 = arith.constant 4 : i32
    %49 = arith.index_cast %c4_i32 : i32 to index
    %c0_32 = arith.constant 0 : index
    %c0_33 = arith.constant 0 : index
    %50 = vector.load %arg2[%49, %c0_32, %c0_33] : memref<16x12x12xf32, #tpu.memory_space<vmem>>, vector<1x12x12xf32>
    %51 = vector.shape_cast %50 : vector<1x12x12xf32> to vector<12x12xf32>
    %52 = arith.index_cast %c4_i32 : i32 to index
    %c0_34 = arith.constant 0 : index
    %c0_35 = arith.constant 0 : index
    %53 = vector.load %arg3[%52, %c0_34, %c0_35] : memref<16x12x4xf32, #tpu.memory_space<vmem>>, vector<1x12x4xf32>
    %54 = vector.shape_cast %53 : vector<1x12x4xf32> to vector<12x4xf32>
    %55 = arith.index_cast %c4_i32 : i32 to index
    %c0_36 = arith.constant 0 : index
    %c0_37 = arith.constant 0 : index
    %56 = vector.load %arg1[%55, %c0_36, %c0_37] : memref<16x4x128xf32, #tpu.memory_space<vmem>>, vector<1x4x128xf32>
    %57 = vector.shape_cast %56 : vector<1x4x128xf32> to vector<4x128xf32>
    %cst_38 = arith.constant dense<0.000000e+00> : vector<12x128xf32>
    %58 = tpu.matmul %51, %48, %cst_38 {dimension_numbers = #tpu.dot_dimension_numbers<[1], [0], [0], [1], [0, 0, 1, 1], [], []>} : vector<12x12xf32>, vector<12x128xf32>, vector<12x128xf32> -> vector<12x128xf32>
    %cst_39 = arith.constant dense<0.000000e+00> : vector<12x128xf32>
    %59 = tpu.matmul %54, %57, %cst_39 {dimension_numbers = #tpu.dot_dimension_numbers<[1], [0], [0], [1], [0, 0, 1, 1], [], []>} : vector<12x4xf32>, vector<4x128xf32>, vector<12x128xf32> -> vector<12x128xf32>
    %60 = arith.addf %58, %59 : vector<12x128xf32>
    %c5_i32 = arith.constant 5 : i32
    %61 = arith.index_cast %c5_i32 : i32 to index
    %c0_40 = arith.constant 0 : index
    %c0_41 = arith.constant 0 : index
    %62 = vector.load %arg2[%61, %c0_40, %c0_41] : memref<16x12x12xf32, #tpu.memory_space<vmem>>, vector<1x12x12xf32>
    %63 = vector.shape_cast %62 : vector<1x12x12xf32> to vector<12x12xf32>
    %64 = arith.index_cast %c5_i32 : i32 to index
    %c0_42 = arith.constant 0 : index
    %c0_43 = arith.constant 0 : index
    %65 = vector.load %arg3[%64, %c0_42, %c0_43] : memref<16x12x4xf32, #tpu.memory_space<vmem>>, vector<1x12x4xf32>
    %66 = vector.shape_cast %65 : vector<1x12x4xf32> to vector<12x4xf32>
    %67 = arith.index_cast %c5_i32 : i32 to index
    %c0_44 = arith.constant 0 : index
    %c0_45 = arith.constant 0 : index
    %68 = vector.load %arg1[%67, %c0_44, %c0_45] : memref<16x4x128xf32, #tpu.memory_space<vmem>>, vector<1x4x128xf32>
    %69 = vector.shape_cast %68 : vector<1x4x128xf32> to vector<4x128xf32>
    %cst_46 = arith.constant dense<0.000000e+00> : vector<12x128xf32>
    %70 = tpu.matmul %63, %60, %cst_46 {dimension_numbers = #tpu.dot_dimension_numbers<[1], [0], [0], [1], [0, 0, 1, 1], [], []>} : vector<12x12xf32>, vector<12x128xf32>, vector<12x128xf32> -> vector<12x128xf32>
    %cst_47 = arith.constant dense<0.000000e+00> : vector<12x128xf32>
    %71 = tpu.matmul %66, %69, %cst_47 {dimension_numbers = #tpu.dot_dimension_numbers<[1], [0], [0], [1], [0, 0, 1, 1], [], []>} : vector<12x4xf32>, vector<4x128xf32>, vector<12x128xf32> -> vector<12x128xf32>
    %72 = arith.addf %70, %71 : vector<12x128xf32>
    %c6_i32 = arith.constant 6 : i32
    %73 = arith.index_cast %c6_i32 : i32 to index
    %c0_48 = arith.constant 0 : index
    %c0_49 = arith.constant 0 : index
    %74 = vector.load %arg2[%73, %c0_48, %c0_49] : memref<16x12x12xf32, #tpu.memory_space<vmem>>, vector<1x12x12xf32>
    %75 = vector.shape_cast %74 : vector<1x12x12xf32> to vector<12x12xf32>
    %76 = arith.index_cast %c6_i32 : i32 to index
    %c0_50 = arith.constant 0 : index
    %c0_51 = arith.constant 0 : index
    %77 = vector.load %arg3[%76, %c0_50, %c0_51] : memref<16x12x4xf32, #tpu.memory_space<vmem>>, vector<1x12x4xf32>
    %78 = vector.shape_cast %77 : vector<1x12x4xf32> to vector<12x4xf32>
    %79 = arith.index_cast %c6_i32 : i32 to index
    %c0_52 = arith.constant 0 : index
    %c0_53 = arith.constant 0 : index
    %80 = vector.load %arg1[%79, %c0_52, %c0_53] : memref<16x4x128xf32, #tpu.memory_space<vmem>>, vector<1x4x128xf32>
    %81 = vector.shape_cast %80 : vector<1x4x128xf32> to vector<4x128xf32>
    %cst_54 = arith.constant dense<0.000000e+00> : vector<12x128xf32>
    %82 = tpu.matmul %75, %72, %cst_54 {dimension_numbers = #tpu.dot_dimension_numbers<[1], [0], [0], [1], [0, 0, 1, 1], [], []>} : vector<12x12xf32>, vector<12x128xf32>, vector<12x128xf32> -> vector<12x128xf32>
    %cst_55 = arith.constant dense<0.000000e+00> : vector<12x128xf32>
    %83 = tpu.matmul %78, %81, %cst_55 {dimension_numbers = #tpu.dot_dimension_numbers<[1], [0], [0], [1], [0, 0, 1, 1], [], []>} : vector<12x4xf32>, vector<4x128xf32>, vector<12x128xf32> -> vector<12x128xf32>
    %84 = arith.addf %82, %83 : vector<12x128xf32>
    %c7_i32 = arith.constant 7 : i32
    %85 = arith.index_cast %c7_i32 : i32 to index
    %c0_56 = arith.constant 0 : index
    %c0_57 = arith.constant 0 : index
    %86 = vector.load %arg2[%85, %c0_56, %c0_57] : memref<16x12x12xf32, #tpu.memory_space<vmem>>, vector<1x12x12xf32>
    %87 = vector.shape_cast %86 : vector<1x12x12xf32> to vector<12x12xf32>
    %88 = arith.index_cast %c7_i32 : i32 to index
    %c0_58 = arith.constant 0 : index
    %c0_59 = arith.constant 0 : index
    %89 = vector.load %arg3[%88, %c0_58, %c0_59] : memref<16x12x4xf32, #tpu.memory_space<vmem>>, vector<1x12x4xf32>
    %90 = vector.shape_cast %89 : vector<1x12x4xf32> to vector<12x4xf32>
    %91 = arith.index_cast %c7_i32 : i32 to index
    %c0_60 = arith.constant 0 : index
    %c0_61 = arith.constant 0 : index
    %92 = vector.load %arg1[%91, %c0_60, %c0_61] : memref<16x4x128xf32, #tpu.memory_space<vmem>>, vector<1x4x128xf32>
    %93 = vector.shape_cast %92 : vector<1x4x128xf32> to vector<4x128xf32>
    %cst_62 = arith.constant dense<0.000000e+00> : vector<12x128xf32>
    %94 = tpu.matmul %87, %84, %cst_62 {dimension_numbers = #tpu.dot_dimension_numbers<[1], [0], [0], [1], [0, 0, 1, 1], [], []>} : vector<12x12xf32>, vector<12x128xf32>, vector<12x128xf32> -> vector<12x128xf32>
    %cst_63 = arith.constant dense<0.000000e+00> : vector<12x128xf32>
    %95 = tpu.matmul %90, %93, %cst_63 {dimension_numbers = #tpu.dot_dimension_numbers<[1], [0], [0], [1], [0, 0, 1, 1], [], []>} : vector<12x4xf32>, vector<4x128xf32>, vector<12x128xf32> -> vector<12x128xf32>
    %96 = arith.addf %94, %95 : vector<12x128xf32>
    %c8_i32 = arith.constant 8 : i32
    %97 = arith.index_cast %c8_i32 : i32 to index
    %c0_64 = arith.constant 0 : index
    %c0_65 = arith.constant 0 : index
    %98 = vector.load %arg2[%97, %c0_64, %c0_65] : memref<16x12x12xf32, #tpu.memory_space<vmem>>, vector<1x12x12xf32>
    %99 = vector.shape_cast %98 : vector<1x12x12xf32> to vector<12x12xf32>
    %100 = arith.index_cast %c8_i32 : i32 to index
    %c0_66 = arith.constant 0 : index
    %c0_67 = arith.constant 0 : index
    %101 = vector.load %arg3[%100, %c0_66, %c0_67] : memref<16x12x4xf32, #tpu.memory_space<vmem>>, vector<1x12x4xf32>
    %102 = vector.shape_cast %101 : vector<1x12x4xf32> to vector<12x4xf32>
    %103 = arith.index_cast %c8_i32 : i32 to index
    %c0_68 = arith.constant 0 : index
    %c0_69 = arith.constant 0 : index
    %104 = vector.load %arg1[%103, %c0_68, %c0_69] : memref<16x4x128xf32, #tpu.memory_space<vmem>>, vector<1x4x128xf32>
    %105 = vector.shape_cast %104 : vector<1x4x128xf32> to vector<4x128xf32>
    %cst_70 = arith.constant dense<0.000000e+00> : vector<12x128xf32>
    %106 = tpu.matmul %99, %96, %cst_70 {dimension_numbers = #tpu.dot_dimension_numbers<[1], [0], [0], [1], [0, 0, 1, 1], [], []>} : vector<12x12xf32>, vector<12x128xf32>, vector<12x128xf32> -> vector<12x128xf32>
    %cst_71 = arith.constant dense<0.000000e+00> : vector<12x128xf32>
    %107 = tpu.matmul %102, %105, %cst_71 {dimension_numbers = #tpu.dot_dimension_numbers<[1], [0], [0], [1], [0, 0, 1, 1], [], []>} : vector<12x4xf32>, vector<4x128xf32>, vector<12x128xf32> -> vector<12x128xf32>
    %108 = arith.addf %106, %107 : vector<12x128xf32>
    %c9_i32 = arith.constant 9 : i32
    %109 = arith.index_cast %c9_i32 : i32 to index
    %c0_72 = arith.constant 0 : index
    %c0_73 = arith.constant 0 : index
    %110 = vector.load %arg2[%109, %c0_72, %c0_73] : memref<16x12x12xf32, #tpu.memory_space<vmem>>, vector<1x12x12xf32>
    %111 = vector.shape_cast %110 : vector<1x12x12xf32> to vector<12x12xf32>
    %112 = arith.index_cast %c9_i32 : i32 to index
    %c0_74 = arith.constant 0 : index
    %c0_75 = arith.constant 0 : index
    %113 = vector.load %arg3[%112, %c0_74, %c0_75] : memref<16x12x4xf32, #tpu.memory_space<vmem>>, vector<1x12x4xf32>
    %114 = vector.shape_cast %113 : vector<1x12x4xf32> to vector<12x4xf32>
    %115 = arith.index_cast %c9_i32 : i32 to index
    %c0_76 = arith.constant 0 : index
    %c0_77 = arith.constant 0 : index
    %116 = vector.load %arg1[%115, %c0_76, %c0_77] : memref<16x4x128xf32, #tpu.memory_space<vmem>>, vector<1x4x128xf32>
    %117 = vector.shape_cast %116 : vector<1x4x128xf32> to vector<4x128xf32>
    %cst_78 = arith.constant dense<0.000000e+00> : vector<12x128xf32>
    %118 = tpu.matmul %111, %108, %cst_78 {dimension_numbers = #tpu.dot_dimension_numbers<[1], [0], [0], [1], [0, 0, 1, 1], [], []>} : vector<12x12xf32>, vector<12x128xf32>, vector<12x128xf32> -> vector<12x128xf32>
    %cst_79 = arith.constant dense<0.000000e+00> : vector<12x128xf32>
    %119 = tpu.matmul %114, %117, %cst_79 {dimension_numbers = #tpu.dot_dimension_numbers<[1], [0], [0], [1], [0, 0, 1, 1], [], []>} : vector<12x4xf32>, vector<4x128xf32>, vector<12x128xf32> -> vector<12x128xf32>
    %120 = arith.addf %118, %119 : vector<12x128xf32>
    %c10_i32 = arith.constant 10 : i32
    %121 = arith.index_cast %c10_i32 : i32 to index
    %c0_80 = arith.constant 0 : index
    %c0_81 = arith.constant 0 : index
    %122 = vector.load %arg2[%121, %c0_80, %c0_81] : memref<16x12x12xf32, #tpu.memory_space<vmem>>, vector<1x12x12xf32>
    %123 = vector.shape_cast %122 : vector<1x12x12xf32> to vector<12x12xf32>
    %124 = arith.index_cast %c10_i32 : i32 to index
    %c0_82 = arith.constant 0 : index
    %c0_83 = arith.constant 0 : index
    %125 = vector.load %arg3[%124, %c0_82, %c0_83] : memref<16x12x4xf32, #tpu.memory_space<vmem>>, vector<1x12x4xf32>
    %126 = vector.shape_cast %125 : vector<1x12x4xf32> to vector<12x4xf32>
    %127 = arith.index_cast %c10_i32 : i32 to index
    %c0_84 = arith.constant 0 : index
    %c0_85 = arith.constant 0 : index
    %128 = vector.load %arg1[%127, %c0_84, %c0_85] : memref<16x4x128xf32, #tpu.memory_space<vmem>>, vector<1x4x128xf32>
    %129 = vector.shape_cast %128 : vector<1x4x128xf32> to vector<4x128xf32>
    %cst_86 = arith.constant dense<0.000000e+00> : vector<12x128xf32>
    %130 = tpu.matmul %123, %120, %cst_86 {dimension_numbers = #tpu.dot_dimension_numbers<[1], [0], [0], [1], [0, 0, 1, 1], [], []>} : vector<12x12xf32>, vector<12x128xf32>, vector<12x128xf32> -> vector<12x128xf32>
    %cst_87 = arith.constant dense<0.000000e+00> : vector<12x128xf32>
    %131 = tpu.matmul %126, %129, %cst_87 {dimension_numbers = #tpu.dot_dimension_numbers<[1], [0], [0], [1], [0, 0, 1, 1], [], []>} : vector<12x4xf32>, vector<4x128xf32>, vector<12x128xf32> -> vector<12x128xf32>
    %132 = arith.addf %130, %131 : vector<12x128xf32>
    %c11_i32 = arith.constant 11 : i32
    %133 = arith.index_cast %c11_i32 : i32 to index
    %c0_88 = arith.constant 0 : index
    %c0_89 = arith.constant 0 : index
    %134 = vector.load %arg2[%133, %c0_88, %c0_89] : memref<16x12x12xf32, #tpu.memory_space<vmem>>, vector<1x12x12xf32>
    %135 = vector.shape_cast %134 : vector<1x12x12xf32> to vector<12x12xf32>
    %136 = arith.index_cast %c11_i32 : i32 to index
    %c0_90 = arith.constant 0 : index
    %c0_91 = arith.constant 0 : index
    %137 = vector.load %arg3[%136, %c0_90, %c0_91] : memref<16x12x4xf32, #tpu.memory_space<vmem>>, vector<1x12x4xf32>
    %138 = vector.shape_cast %137 : vector<1x12x4xf32> to vector<12x4xf32>
    %139 = arith.index_cast %c11_i32 : i32 to index
    %c0_92 = arith.constant 0 : index
    %c0_93 = arith.constant 0 : index
    %140 = vector.load %arg1[%139, %c0_92, %c0_93] : memref<16x4x128xf32, #tpu.memory_space<vmem>>, vector<1x4x128xf32>
    %141 = vector.shape_cast %140 : vector<1x4x128xf32> to vector<4x128xf32>
    %cst_94 = arith.constant dense<0.000000e+00> : vector<12x128xf32>
    %142 = tpu.matmul %135, %132, %cst_94 {dimension_numbers = #tpu.dot_dimension_numbers<[1], [0], [0], [1], [0, 0, 1, 1], [], []>} : vector<12x12xf32>, vector<12x128xf32>, vector<12x128xf32> -> vector<12x128xf32>
    %cst_95 = arith.constant dense<0.000000e+00> : vector<12x128xf32>
    %143 = tpu.matmul %138, %141, %cst_95 {dimension_numbers = #tpu.dot_dimension_numbers<[1], [0], [0], [1], [0, 0, 1, 1], [], []>} : vector<12x4xf32>, vector<4x128xf32>, vector<12x128xf32> -> vector<12x128xf32>
    %144 = arith.addf %142, %143 : vector<12x128xf32>
    %c12_i32 = arith.constant 12 : i32
    %145 = arith.index_cast %c12_i32 : i32 to index
    %c0_96 = arith.constant 0 : index
    %c0_97 = arith.constant 0 : index
    %146 = vector.load %arg2[%145, %c0_96, %c0_97] : memref<16x12x12xf32, #tpu.memory_space<vmem>>, vector<1x12x12xf32>
    %147 = vector.shape_cast %146 : vector<1x12x12xf32> to vector<12x12xf32>
    %148 = arith.index_cast %c12_i32 : i32 to index
    %c0_98 = arith.constant 0 : index
    %c0_99 = arith.constant 0 : index
    %149 = vector.load %arg3[%148, %c0_98, %c0_99] : memref<16x12x4xf32, #tpu.memory_space<vmem>>, vector<1x12x4xf32>
    %150 = vector.shape_cast %149 : vector<1x12x4xf32> to vector<12x4xf32>
    %151 = arith.index_cast %c12_i32 : i32 to index
    %c0_100 = arith.constant 0 : index
    %c0_101 = arith.constant 0 : index
    %152 = vector.load %arg1[%151, %c0_100, %c0_101] : memref<16x4x128xf32, #tpu.memory_space<vmem>>, vector<1x4x128xf32>
    %153 = vector.shape_cast %152 : vector<1x4x128xf32> to vector<4x128xf32>
    %cst_102 = arith.constant dense<0.000000e+00> : vector<12x128xf32>
    %154 = tpu.matmul %147, %144, %cst_102 {dimension_numbers = #tpu.dot_dimension_numbers<[1], [0], [0], [1], [0, 0, 1, 1], [], []>} : vector<12x12xf32>, vector<12x128xf32>, vector<12x128xf32> -> vector<12x128xf32>
    %cst_103 = arith.constant dense<0.000000e+00> : vector<12x128xf32>
    %155 = tpu.matmul %150, %153, %cst_103 {dimension_numbers = #tpu.dot_dimension_numbers<[1], [0], [0], [1], [0, 0, 1, 1], [], []>} : vector<12x4xf32>, vector<4x128xf32>, vector<12x128xf32> -> vector<12x128xf32>
    %156 = arith.addf %154, %155 : vector<12x128xf32>
    %c13_i32 = arith.constant 13 : i32
    %157 = arith.index_cast %c13_i32 : i32 to index
    %c0_104 = arith.constant 0 : index
    %c0_105 = arith.constant 0 : index
    %158 = vector.load %arg2[%157, %c0_104, %c0_105] : memref<16x12x12xf32, #tpu.memory_space<vmem>>, vector<1x12x12xf32>
    %159 = vector.shape_cast %158 : vector<1x12x12xf32> to vector<12x12xf32>
    %160 = arith.index_cast %c13_i32 : i32 to index
    %c0_106 = arith.constant 0 : index
    %c0_107 = arith.constant 0 : index
    %161 = vector.load %arg3[%160, %c0_106, %c0_107] : memref<16x12x4xf32, #tpu.memory_space<vmem>>, vector<1x12x4xf32>
    %162 = vector.shape_cast %161 : vector<1x12x4xf32> to vector<12x4xf32>
    %163 = arith.index_cast %c13_i32 : i32 to index
    %c0_108 = arith.constant 0 : index
    %c0_109 = arith.constant 0 : index
    %164 = vector.load %arg1[%163, %c0_108, %c0_109] : memref<16x4x128xf32, #tpu.memory_space<vmem>>, vector<1x4x128xf32>
    %165 = vector.shape_cast %164 : vector<1x4x128xf32> to vector<4x128xf32>
    %cst_110 = arith.constant dense<0.000000e+00> : vector<12x128xf32>
    %166 = tpu.matmul %159, %156, %cst_110 {dimension_numbers = #tpu.dot_dimension_numbers<[1], [0], [0], [1], [0, 0, 1, 1], [], []>} : vector<12x12xf32>, vector<12x128xf32>, vector<12x128xf32> -> vector<12x128xf32>
    %cst_111 = arith.constant dense<0.000000e+00> : vector<12x128xf32>
    %167 = tpu.matmul %162, %165, %cst_111 {dimension_numbers = #tpu.dot_dimension_numbers<[1], [0], [0], [1], [0, 0, 1, 1], [], []>} : vector<12x4xf32>, vector<4x128xf32>, vector<12x128xf32> -> vector<12x128xf32>
    %168 = arith.addf %166, %167 : vector<12x128xf32>
    %c14_i32 = arith.constant 14 : i32
    %169 = arith.index_cast %c14_i32 : i32 to index
    %c0_112 = arith.constant 0 : index
    %c0_113 = arith.constant 0 : index
    %170 = vector.load %arg2[%169, %c0_112, %c0_113] : memref<16x12x12xf32, #tpu.memory_space<vmem>>, vector<1x12x12xf32>
    %171 = vector.shape_cast %170 : vector<1x12x12xf32> to vector<12x12xf32>
    %172 = arith.index_cast %c14_i32 : i32 to index
    %c0_114 = arith.constant 0 : index
    %c0_115 = arith.constant 0 : index
    %173 = vector.load %arg3[%172, %c0_114, %c0_115] : memref<16x12x4xf32, #tpu.memory_space<vmem>>, vector<1x12x4xf32>
    %174 = vector.shape_cast %173 : vector<1x12x4xf32> to vector<12x4xf32>
    %175 = arith.index_cast %c14_i32 : i32 to index
    %c0_116 = arith.constant 0 : index
    %c0_117 = arith.constant 0 : index
    %176 = vector.load %arg1[%175, %c0_116, %c0_117] : memref<16x4x128xf32, #tpu.memory_space<vmem>>, vector<1x4x128xf32>
    %177 = vector.shape_cast %176 : vector<1x4x128xf32> to vector<4x128xf32>
    %cst_118 = arith.constant dense<0.000000e+00> : vector<12x128xf32>
    %178 = tpu.matmul %171, %168, %cst_118 {dimension_numbers = #tpu.dot_dimension_numbers<[1], [0], [0], [1], [0, 0, 1, 1], [], []>} : vector<12x12xf32>, vector<12x128xf32>, vector<12x128xf32> -> vector<12x128xf32>
    %cst_119 = arith.constant dense<0.000000e+00> : vector<12x128xf32>
    %179 = tpu.matmul %174, %177, %cst_119 {dimension_numbers = #tpu.dot_dimension_numbers<[1], [0], [0], [1], [0, 0, 1, 1], [], []>} : vector<12x4xf32>, vector<4x128xf32>, vector<12x128xf32> -> vector<12x128xf32>
    %180 = arith.addf %178, %179 : vector<12x128xf32>
    %c15_i32 = arith.constant 15 : i32
    %181 = arith.index_cast %c15_i32 : i32 to index
    %c0_120 = arith.constant 0 : index
    %c0_121 = arith.constant 0 : index
    %182 = vector.load %arg2[%181, %c0_120, %c0_121] : memref<16x12x12xf32, #tpu.memory_space<vmem>>, vector<1x12x12xf32>
    %183 = vector.shape_cast %182 : vector<1x12x12xf32> to vector<12x12xf32>
    %184 = arith.index_cast %c15_i32 : i32 to index
    %c0_122 = arith.constant 0 : index
    %c0_123 = arith.constant 0 : index
    %185 = vector.load %arg3[%184, %c0_122, %c0_123] : memref<16x12x4xf32, #tpu.memory_space<vmem>>, vector<1x12x4xf32>
    %186 = vector.shape_cast %185 : vector<1x12x4xf32> to vector<12x4xf32>
    %187 = arith.index_cast %c15_i32 : i32 to index
    %c0_124 = arith.constant 0 : index
    %c0_125 = arith.constant 0 : index
    %188 = vector.load %arg1[%187, %c0_124, %c0_125] : memref<16x4x128xf32, #tpu.memory_space<vmem>>, vector<1x4x128xf32>
    %189 = vector.shape_cast %188 : vector<1x4x128xf32> to vector<4x128xf32>
    %cst_126 = arith.constant dense<0.000000e+00> : vector<12x128xf32>
    %190 = tpu.matmul %183, %180, %cst_126 {dimension_numbers = #tpu.dot_dimension_numbers<[1], [0], [0], [1], [0, 0, 1, 1], [], []>} : vector<12x12xf32>, vector<12x128xf32>, vector<12x128xf32> -> vector<12x128xf32>
    %cst_127 = arith.constant dense<0.000000e+00> : vector<12x128xf32>
    %191 = tpu.matmul %186, %189, %cst_127 {dimension_numbers = #tpu.dot_dimension_numbers<[1], [0], [0], [1], [0, 0, 1, 1], [], []>} : vector<12x4xf32>, vector<4x128xf32>, vector<12x128xf32> -> vector<12x128xf32>
    %192 = arith.addf %190, %191 : vector<12x128xf32>
    %c16_i32 = arith.constant 16 : i32
    %c0_128 = arith.constant 0 : index
    %c0_129 = arith.constant 0 : index
    %193 = vector.load %arg4[%c0_128, %c0_129] : memref<32x12xf32, #tpu.memory_space<vmem>>, vector<32x12xf32>
    %cst_130 = arith.constant dense<0.000000e+00> : vector<32x128xf32>
    %194 = tpu.matmul %193, %192, %cst_130 {dimension_numbers = #tpu.dot_dimension_numbers<[1], [0], [0], [1], [0, 0, 1, 1], [], []>} : vector<32x12xf32>, vector<12x128xf32>, vector<32x128xf32> -> vector<32x128xf32>
    %c0_131 = arith.constant 0 : index
    %c0_132 = arith.constant 0 : index
    %195 = vector.load %arg6[%c0_131, %c0_132] : memref<32x128xf32, #tpu.memory_space<vmem>>, vector<32x128xf32>
    tpu.vector_store %arg6[%c0_131, %c0_132], %194 {strides = array<i32>} : memref<32x128xf32, #tpu.memory_space<vmem>>, vector<32x128xf32>,
    return
  }
  func.func @transform_0(%arg0: i32) -> (i32, i32, i32) {
    %c0_i32 = arith.constant 0 : i32
    %c0_i32_0 = arith.constant 0 : i32
    %c0_i32_1 = arith.constant 0 : i32
    return %c0_i32, %c0_i32_0, %arg0 : i32, i32, i32
  }
  func.func @transform_1(%arg0: i32) -> (i32, i32, i32) {
    %c0_i32 = arith.constant 0 : i32
    %c0_i32_0 = arith.constant 0 : i32
    %c0_i32_1 = arith.constant 0 : i32
    %c0_i32_2 = arith.constant 0 : i32
    return %c0_i32, %c0_i32_0, %c0_i32_1 : i32, i32, i32
  }
  func.func @transform_2(%arg0: i32) -> (i32, i32, i32) {
    %c0_i32 = arith.constant 0 : i32
    %c0_i32_0 = arith.constant 0 : i32
    %c0_i32_1 = arith.constant 0 : i32
    %c0_i32_2 = arith.constant 0 : i32
    return %c0_i32, %c0_i32_0, %c0_i32_1 : i32, i32, i32
  }
  func.func @transform_3(%arg0: i32) -> (i32, i32) {
    %c0_i32 = arith.constant 0 : i32
    %c0_i32_0 = arith.constant 0 : i32
    %c0_i32_1 = arith.constant 0 : i32
    return %c0_i32, %c0_i32_0 : i32, i32
  }
  func.func @transform_4(%arg0: i32) -> (i32, i32) {
    %c0_i32 = arith.constant 0 : i32
    %c0_i32_0 = arith.constant 0 : i32
    return %c0_i32, %arg0 : i32, i32
  }
  func.func @transform_5(%arg0: i32) -> (i32, i32) {
    %c0_i32 = arith.constant 0 : i32
    %c0_i32_0 = arith.constant 0 : i32
    return %c0_i32, %arg0 : i32, i32
  }
}

</mosaic_0001>

<bundles_post_ra>
// kernel: custom-call
= control target key start
LH: loop header
LB: loop body
LE: loop exit
PB: predicated region body
PF: predicated region fallthrough
CT: control target
= control target key end

     0   :  { %s6_s0 = inlined_call_operand.vmem [shape: f32[16,12,12], index: 0, kind: output, shape index: {}]  }

// kernel: custom-call.1
= control target key start
LH: loop header
LB: loop body
LE: loop exit
PB: predicated region body
PF: predicated region fallthrough
CT: control target
= control target key end

     0   :  { %s6_s0 = inlined_call_operand.vmem [shape: f32[16,12,4], index: 0, kind: output, shape index: {}]  }

// kernel: kalman_forecast.1
= control target key start
LH: loop header
LB: loop body
LE: loop exit
PB: predicated region body
PF: predicated region fallthrough
CT: control target
= control target key end

     0   :  { %vm34_vm0 = vcmask 1043456   ;;  %vm27_vm1 = vcmask 31744   ;;  %vm3581_vm2 = vmmov 1   ;;  %vm113_vm4 = vcmask 97280   ;;  %s4055_s0 = inlined_call_operand.vmem [shape: f32[16,4,128], index: 0, kind: input, shape index: {}]   ;;  %s4056_s2 = inlined_call_operand.vmem [shape: f32[16,12,4], index: 2, kind: input, shape index: {}]   ;;  %s4057_s4 = inlined_call_operand.vmem [shape: f32[12,128], index: 4, kind: input, shape index: {}]   ;;  %s4058_s1 = inlined_call_operand.vmem [shape: f32[16,12,12], index: 1, kind: input, shape index: {}]   ;;  %s4059_s3 = inlined_call_operand.vmem [shape: f32[32,12], index: 3, kind: input, shape index: {}]   ;;  %s4060_s5 = inlined_call_operand.vmem [shape: f32[32,128], index: 5, kind: output, shape index: {}]  }
   0x1   :  { %v26_v0 = vld [vmem:[%s4055_s0] sm:$0xf]  ;;  %v25_v2 = vld [vmem:[%s4056_s2 + $0x8] sm:$0xf]  ;;  %vm3630_vm3 = vmpackc.low %vm34_vm0, %vm3581_vm2 }
   0x2   :  { %v24_v1 = vld [vmem:[%s4056_s2] sm:$0xff]  ;;  %3244 = vmatprep.subr.msk.mxu0 %vm34_vm0, %v26_v0  ;;  %v21_v4 = vld [vmem:[%s4057_s4 + $0x8] sm:$0xf]  ;;  %v2958_v9 = vld [vmem:[%s4056_s2 + $0x10] sm:$0xff] }
   0x3   :  { %3246 = vmatprep.mubr.msk.f32.mxu0 %vm27_vm1, %v24_v1  ;;  %v20_v3 = vld [vmem:[%s4057_s4] sm:$0xff]  ;;  %3245 = vmatpush3.msk.msra.mxu0 %vm34_vm0, %v26_v0  ;;  %v23_v10 = vld [vmem:[%s4058_s1 + $0x8] sm:$0xf]  ;;  %v2959_v11 = vld [vmem:[%s4056_s2 + $0x18] sm:$0xf] }
   0x4   :  { %v3446_v6 = vpack.c.bf16 %v21_v4, %v20_v3  ;;  %v22_v7 = vld [vmem:[%s4058_s1] sm:$0xff]  ;;  %3247 = vmatmul.mubr.msk.f32.vlgmr.msra.gmra.mrb[0].mxu0 %vm27_vm1, %v25_v2  ;;  %3258 = vmatprep.mubr.msk.f32.mxu1 %vm27_vm1, %v2958_v9  ;;  %v2956_v12 = vld [vmem:[%s4058_s1 + $0x10] sm:$0xff]  ;;  %v2957_v16 = vld [vmem:[%s4058_s1 + $0x18] sm:$0xf] }
   0x5   :  { %v2960_v8 = vld [vmem:[%s4055_s0 + $0x4] sm:$0xf]  ;;  %3253 = vmatprep.mubr.msk.f32.mxu0 %vm113_vm4, %v22_v7  ;;  %v2971_v17 = vld [vmem:[%s4055_s0 + $0x8] sm:$0xf]  ;;  %v2982_v26 = vld [vmem:[%s4055_s0 + $0xc] sm:$0xf] }
   0x6   :  { %3256 = vmatprep.subr.msk.mxu1 %vm34_vm0, %v2960_v8  ;;  %3448 = vmatprep.subr.msk.bf16.mxu0 %vm3630_vm3, %v3446_v6  ;;  %v2969_v18 = vld [vmem:[%s4056_s2 + $0x20] sm:$0xff]  ;;  %v2970_v19 = vld [vmem:[%s4056_s2 + $0x28] sm:$0xf]  ;;  %v2980_v28 = vld [vmem:[%s4056_s2 + $0x30] sm:$0xff] }
   0x7   :  { %3451 = vmatpush3.bf16.msk.msra.mxu0 %vm3630_vm3, %v3446_v6  ;;  %3257 = vmatpush3.msk.msra.mxu1 %vm34_vm0, %v2960_v8  ;;  %v2967_v20 = vld [vmem:[%s4058_s1 + $0x20] sm:$0xff]  ;;  %v2968_v24 = vld [vmem:[%s4058_s1 + $0x28] sm:$0xf]  ;;  %v2981_v29 = vld [vmem:[%s4056_s2 + $0x38] sm:$0xf] }
   0x8   :  { %3259 = vmatmul.mubr.msk.f32.vlgmr.msra.gmra.mrb[0].mxu1 %vm27_vm1, %v2959_v11  ;;  %v2978_v30 = vld [vmem:[%s4058_s1 + $0x30] sm:$0xff]  ;;  %v2991_v32 = vld [vmem:[%s4056_s2 + $0x40] sm:$0xff]  ;;  %v2979_v38 = vld [vmem:[%s4058_s1 + $0x38] sm:$0xf] }
   0x9   :  { %3265 = vmatprep.mubr.msk.f32.mxu1 %vm113_vm4, %v2956_v12  ;;  %v2993_v31 = vld [vmem:[%s4055_s0 + $0x10] sm:$0xf]  ;;  %v2992_v39 = vld [vmem:[%s4056_s2 + $0x48] sm:$0xf]  ;;  %v2989_v40 = vld [vmem:[%s4058_s1 + $0x40] sm:$0xff] }
   0xa   :  { %v3004_v41 = vld [vmem:[%s4055_s0 + $0x14] sm:$0xf]  ;;  %v2990_v46 = vld [vmem:[%s4058_s1 + $0x48] sm:$0xf]  ;;  %v3003_v47 = vld [vmem:[%s4056_s2 + $0x58] sm:$0xf] }
   0xb   :  { %v3002_v42 = vld [vmem:[%s4056_s2 + $0x50] sm:$0xff]  ;;  %v3015_v49 = vld [vmem:[%s4055_s0 + $0x18] sm:$0xf]  ;;  %v3013_v50 = vld [vmem:[%s4056_s2 + $0x60] sm:$0xff] }
   0xc   :  { %3254 = vmatmul.mubr.msk.f32.vlgmr.msra.gmra.mrb[0].mxu0 %vm113_vm4, %v23_v10  ;;  %v3000_v48 = vld [vmem:[%s4058_s1 + $0x50] sm:$0xff]  ;;  %v3001_v54 = vld [vmem:[%s4058_s1 + $0x58] sm:$0xf]  ;;  %v3014_v55 = vld [vmem:[%s4056_s2 + $0x68] sm:$0xf] }
   0xd   :  { %3277 = vmatprep.mubr.msk.f32.mxu0 %vm113_vm4, %v2967_v20  ;;  %v3011_v56 = vld [vmem:[%s4058_s1 + $0x60] sm:$0xff]  ;;  %v3026_v57 = vld [vmem:[%s4055_s0 + $0x1c] sm:$0xf]  ;;  %v3024_v58 = vld [vmem:[%s4056_s2 + $0x70] sm:$0xff] }
   0xe   :  { %v3012_v62 = vld [vmem:[%s4058_s1 + $0x68] sm:$0xf]  ;;  %v3025_v63 = vld [vmem:[%s4056_s2 + $0x78] sm:$0xf]  ;;  %v3022_v0 = vld [vmem:[%s4058_s1 + $0x70] sm:$0xff] }
   0xf   :  { %v3037_v1 = vld [vmem:[%s4055_s0 + $0x20] sm:$0xf]  ;;  %v3023_v7 = vld [vmem:[%s4058_s1 + $0x78] sm:$0xf]  ;;  %v3036_v8 = vld [vmem:[%s4056_s2 + $0x88] sm:$0xf] }
  0x10   :  { %v3035_v2 = vld [vmem:[%s4056_s2 + $0x80] sm:$0xff]  ;;  %v3046_v11 = vld [vmem:[%s4056_s2 + $0x90] sm:$0xff] }
  0x11   :  { %v3033_v9 = vld [vmem:[%s4058_s1 + $0x80] sm:$0xff] }
  0x12   :  { %v3048_v10 = vld [vmem:[%s4055_s0 + $0x24] sm:$0xf] }
  0xdf   :  { %v3255_v13 = vpop.f32.mrb[0].mxu0 }
  0xe0   :  { %v189_v14 = vpop.f32.mrb[1].mxu0 }
  0xe1   :  { %v3452_v15 = vpack.c.bf16 %v3255_v13, %v189_v14 }
  0xe3   :  { %3454 = vmatprep.subr.msk.bf16.mxu1 %vm3630_vm3, %v3452_v15 }
  0xe4   :  { %3457 = vmatpush3.bf16.msk.msra.mxu1 %vm3630_vm3, %v3452_v15  ;;  %v3034_v15 = vld [vmem:[%s4058_s1 + $0x88] sm:$0xf] }
  0xe5   :  { %3268 = vmatprep.subr.msk.mxu1 %vm34_vm0, %v2971_v17 }
  0xe7   :  { %3266 = vmatmul.mubr.msk.f32.vlgmr.msra.gmra.mrb[0].mxu1 %vm113_vm4, %v2957_v16  ;;  %v3047_v16 = vld [vmem:[%s4056_s2 + $0x98] sm:$0xf] }
  0xe8   :  { %3269 = vmatpush3.msk.msra.mxu1 %vm34_vm0, %v2971_v17  ;;  %3270 = vmatprep.mubr.msk.f32.mxu1 %vm27_vm1, %v2969_v18  ;;  %v3044_v17 = vld [vmem:[%s4058_s1 + $0x90] sm:$0xff]  ;;  %v3059_v18 = vld [vmem:[%s4055_s0 + $0x28] sm:$0xf] }
  0xe9   :  { %3280 = vmatprep.subr.msk.mxu1 %vm34_vm0, %v2982_v26 }
  0xeb   :  { %3271 = vmatmul.mubr.msk.f32.vlgmr.msra.gmra.mrb[2].mxu1 %vm27_vm1, %v2970_v19  ;;  %v3057_v19 = vld [vmem:[%s4056_s2 + $0xa0] sm:$0xff] }
  0xec   :  { %3281 = vmatpush3.msk.msra.mxu1 %vm34_vm0, %v2982_v26  ;;  %3282 = vmatprep.mubr.msk.f32.mxu1 %vm27_vm1, %v2980_v28  ;;  %v3070_v26 = vld [vmem:[%s4055_s0 + $0x2c] sm:$0xf] }
  0xef   :  { %3283 = vmatmul.mubr.msk.f32.vlgmr.msra.gmra.mrb[4].mxu1 %vm27_vm1, %v2981_v29 }
  0xf0   :  { %3289 = vmatprep.mubr.msk.f32.mxu1 %vm113_vm4, %v2978_v30 }
 0x1ba   :  { %v3267_v21 = vpop.f32.mrb[0].mxu1 }
 0x1bb   :  { %v365_v22 = vpop.f32.mrb[1].mxu1 }
 0x1bc   :  { %v3458_v23 = vpack.c.bf16 %v3267_v21, %v365_v22 }
 0x1be   :  { %3460 = vmatprep.subr.msk.bf16.mxu0 %vm3630_vm3, %v3458_v23  ;;  %v3272_v25 = vpop.f32.mrb[2].mxu1 }
 0x1bf   :  { %3463 = vmatpush3.bf16.msk.msra.mxu0 %vm3630_vm3, %v3458_v23  ;;  %v457_v27 = vpop.f32.mrb[3].mxu1  ;;  %v3045_v23 = vld [vmem:[%s4058_s1 + $0x98] sm:$0xf] }
 0x1c0   :  { %3292 = vmatprep.subr.msk.mxu0 %vm34_vm0, %v2993_v31 }
 0x1c2   :  { %3278 = vmatmul.mubr.msk.f32.vlgmr.msra.gmra.mrb[2].mxu0 %vm113_vm4, %v2968_v24  ;;  %v3058_v24 = vld [vmem:[%s4056_s2 + $0xa8] sm:$0xf] }
 0x1c3   :  { %3294 = vmatprep.mubr.msk.f32.mxu0 %vm27_vm1, %v2991_v32  ;;  %3293 = vmatpush3.msk.msra.mxu0 %vm34_vm0, %v2993_v31  ;;  %v3056_v31 = vld [vmem:[%s4058_s1 + $0xa8] sm:$0xf]  ;;  %v3069_v32 = vld [vmem:[%s4056_s2 + $0xb8] sm:$0xf] }
 0x1c6   :  { %3295 = vmatmul.mubr.msk.f32.vlgmr.msra.gmra.mrb[4].mxu0 %vm27_vm1, %v2992_v39  ;;  %v3067_v39 = vld [vmem:[%s4058_s1 + $0xb8] sm:$0xf] }
 0x1c7   :  { %3301 = vmatprep.mubr.msk.f32.mxu0 %vm113_vm4, %v2989_v40  ;;  %v3080_v40 = vld [vmem:[%s4056_s2 + $0xc8] sm:$0xf] }
 0x295   :  { %v3279_v33 = vpop.f32.mrb[2].mxu0 }
 0x296   :  { %v547_v34 = vadd.f32 %v3279_v33, %v3272_v25  ;;  %v541_v35 = vpop.f32.mrb[3].mxu0  ;;  %v3055_v25 = vld [vmem:[%s4058_s1 + $0xa0] sm:$0xff]  ;;  %v3066_v33 = vld [vmem:[%s4058_s1 + $0xb0] sm:$0xff] }
 0x297   :  { %v542_v36 = vadd.f32 %v541_v35, %v457_v27  ;;  %v3068_v27 = vld [vmem:[%s4056_s2 + $0xb0] sm:$0xff]  ;;  %v3079_v35 = vld [vmem:[%s4056_s2 + $0xc0] sm:$0xff] }
 0x299   :  { %v3464_v37 = vpack.c.bf16 %v547_v34, %v542_v36  ;;  %v3081_v34 = vld [vmem:[%s4055_s0 + $0x30] sm:$0xf] }
 0x29b   :  { %3466 = vmatprep.subr.msk.bf16.mxu1 %vm3630_vm3, %v3464_v37 }
 0x29c   :  { %3469 = vmatpush3.bf16.msk.msra.mxu1 %vm3630_vm3, %v3464_v37 }
 0x29d   :  { %3304 = vmatprep.subr.msk.mxu1 %vm34_vm0, %v3004_v41 }
 0x29f   :  { %3290 = vmatmul.mubr.msk.f32.vlgmr.msra.gmra.mrb[4].mxu1 %vm113_vm4, %v2979_v38 }
 0x2a0   :  { %3306 = vmatprep.mubr.msk.f32.mxu1 %vm27_vm1, %v3002_v42  ;;  %3305 = vmatpush3.msk.msra.mxu1 %vm34_vm0, %v3004_v41  ;;  %v3077_v41 = vld [vmem:[%s4058_s1 + $0xc0] sm:$0xff]  ;;  %v3092_v42 = vld [vmem:[%s4055_s0 + $0x34] sm:$0xf] }
 0x2a3   :  { %3307 = vmatmul.mubr.msk.f32.vlgmr.msra.gmra.mrb[6].mxu1 %vm27_vm1, %v3003_v47  ;;  %v3078_v47 = vld [vmem:[%s4058_s1 + $0xc8] sm:$0xf] }
 0x2a4   :  { %3313 = vmatprep.mubr.msk.f32.mxu1 %vm113_vm4, %v3000_v48  ;;  %v3091_v48 = vld [vmem:[%s4056_s2 + $0xd8] sm:$0xf] }
 0x372   :  { %v3291_v43 = vpop.f32.mrb[4].mxu1 }
 0x373   :  { %v717_v44 = vpop.f32.mrb[5].mxu1 }
 0x374   :  { %v3470_v45 = vpack.c.bf16 %v3291_v43, %v717_v44  ;;  %v3090_v43 = vld [vmem:[%s4056_s2 + $0xd0] sm:$0xff] }
 0x376   :  { %3472 = vmatprep.subr.msk.bf16.mxu0 %vm3630_vm3, %v3470_v45 }
 0x377   :  { %3475 = vmatpush3.bf16.msk.msra.mxu0 %vm3630_vm3, %v3470_v45 }
 0x378   :  { %3316 = vmatprep.subr.msk.mxu0 %vm34_vm0, %v3015_v49 }
 0x37a   :  { %3302 = vmatmul.mubr.msk.f32.vlgmr.msra.gmra.mrb[4].mxu0 %vm113_vm4, %v2990_v46 }
 0x37b   :  { %3318 = vmatprep.mubr.msk.f32.mxu0 %vm27_vm1, %v3013_v50  ;;  %3317 = vmatpush3.msk.msra.mxu0 %vm34_vm0, %v3015_v49  ;;  %v3088_v49 = vld [vmem:[%s4058_s1 + $0xd0] sm:$0xff]  ;;  %v3103_v50 = vld [vmem:[%s4055_s0 + $0x38] sm:$0xf] }
 0x37e   :  { %3319 = vmatmul.mubr.msk.f32.vlgmr.msra.gmra.mrb[6].mxu0 %vm27_vm1, %v3014_v55  ;;  %v3089_v55 = vld [vmem:[%s4058_s1 + $0xd8] sm:$0xf] }
 0x37f   :  { %3325 = vmatprep.mubr.msk.f32.mxu0 %vm113_vm4, %v3011_v56  ;;  %v3102_v56 = vld [vmem:[%s4056_s2 + $0xe8] sm:$0xf] }
 0x44d   :  { %v3303_v51 = vpop.f32.mrb[4].mxu0 }
 0x44e   :  { %v893_v52 = vpop.f32.mrb[5].mxu0 }
 0x44f   :  { %v3476_v53 = vpack.c.bf16 %v3303_v51, %v893_v52  ;;  %v3101_v51 = vld [vmem:[%s4056_s2 + $0xe0] sm:$0xff] }
 0x451   :  { %3478 = vmatprep.subr.msk.bf16.mxu1 %vm3630_vm3, %v3476_v53 }
 0x452   :  { %3481 = vmatpush3.bf16.msk.msra.mxu1 %vm3630_vm3, %v3476_v53 }
 0x453   :  { %3328 = vmatprep.subr.msk.mxu1 %vm34_vm0, %v3026_v57 }
 0x455   :  { %3314 = vmatmul.mubr.msk.f32.vlgmr.msra.gmra.mrb[6].mxu1 %vm113_vm4, %v3001_v54 }
 0x456   :  { %3330 = vmatprep.mubr.msk.f32.mxu1 %vm27_vm1, %v3024_v58  ;;  %3329 = vmatpush3.msk.msra.mxu1 %vm34_vm0, %v3026_v57  ;;  %v3099_v57 = vld [vmem:[%s4058_s1 + $0xe0] sm:$0xff]  ;;  %v3114_v58 = vld [vmem:[%s4055_s0 + $0x3c] sm:$0xf] }
 0x459   :  { %3331 = vmatmul.mubr.msk.f32.vlgmr.msra.gmra.mrb[8].mxu1 %vm27_vm1, %v3025_v63  ;;  %v3100_v63 = vld [vmem:[%s4058_s1 + $0xe8] sm:$0xf] }
 0x45a   :  { %3337 = vmatprep.mubr.msk.f32.mxu1 %vm113_vm4, %v3022_v0  ;;  %v3113_v0 = vld [vmem:[%s4056_s2 + $0xf8] sm:$0xf] }
 0x528   :  { %v3315_v59 = vpop.f32.mrb[6].mxu1 }
 0x529   :  { %v1069_v60 = vpop.f32.mrb[7].mxu1 }
 0x52a   :  { %v3482_v61 = vpack.c.bf16 %v3315_v59, %v1069_v60  ;;  %v3112_v59 = vld [vmem:[%s4056_s2 + $0xf0] sm:$0xff] }
 0x52c   :  { %3484 = vmatprep.subr.msk.bf16.mxu0 %vm3630_vm3, %v3482_v61 }
 0x52d   :  { %3487 = vmatpush3.bf16.msk.msra.mxu0 %vm3630_vm3, %v3482_v61 }
 0x52e   :  { %3340 = vmatprep.subr.msk.mxu0 %vm34_vm0, %v3037_v1 }
 0x530   :  { %3326 = vmatmul.mubr.msk.f32.vlgmr.msra.gmra.mrb[6].mxu0 %vm113_vm4, %v3012_v62 }
 0x531   :  { %3342 = vmatprep.mubr.msk.f32.mxu0 %vm27_vm1, %v3035_v2  ;;  %3341 = vmatpush3.msk.msra.mxu0 %vm34_vm0, %v3037_v1  ;;  %v3110_v1 = vld [vmem:[%s4058_s1 + $0xf0] sm:$0xff] }
 0x534   :  { %3343 = vmatmul.mubr.msk.f32.vlgmr.msra.gmra.mrb[8].mxu0 %vm27_vm1, %v3036_v8 }
 0x535   :  { %3349 = vmatprep.mubr.msk.f32.mxu0 %vm113_vm4, %v3033_v9 }
 0x603   :  { %v3327_v3 = vpop.f32.mrb[6].mxu0 }
 0x604   :  { %v1245_v4 = vpop.f32.mrb[7].mxu0 }
 0x605   :  { %v3488_v6 = vpack.c.bf16 %v3327_v3, %v1245_v4 }
 0x607   :  { %3490 = vmatprep.subr.msk.bf16.mxu1 %vm3630_vm3, %v3488_v6 }
 0x608   :  { %3493 = vmatpush3.bf16.msk.msra.mxu1 %vm3630_vm3, %v3488_v6  ;;  %v3111_v6 = vld [vmem:[%s4058_s1 + $0xf8] sm:$0xf] }
 0x609   :  { %3352 = vmatprep.subr.msk.mxu1 %vm34_vm0, %v3048_v10 }
 0x60b   :  { %3338 = vmatmul.mubr.msk.f32.vlgmr.msra.gmra.mrb[8].mxu1 %vm113_vm4, %v3023_v7  ;;  %v2838_v7 = vld [vmem:[%s4059_s3] sm:$0xff] }
 0x60c   :  { %3354 = vmatprep.mubr.msk.f32.mxu1 %vm27_vm1, %v3046_v11  ;;  %3353 = vmatpush3.msk.msra.mxu1 %vm34_vm0, %v3048_v10  ;;  %v2839_v11 = vld [vmem:[%s4059_s3 + $0x8] sm:$0xff] }
 0x60f   :  { %3355 = vmatmul.mubr.msk.f32.vlgmr.msra.gmra.mrb[10].mxu1 %vm27_vm1, %v3047_v16 }
 0x610   :  { %3361 = vmatprep.mubr.msk.f32.mxu1 %vm113_vm4, %v3044_v17 }
 0x6de   :  { %v3339_v12 = vpop.f32.mrb[8].mxu1 }
 0x6df   :  { %v1421_v13 = vpop.f32.mrb[9].mxu1 }
 0x6e0   :  { %v3494_v14 = vpack.c.bf16 %v3339_v12, %v1421_v13  ;;  %v2840_v12 = vld [vmem:[%s4059_s3 + $0x10] sm:$0xff]  ;;  %v2841_v13 = vld [vmem:[%s4059_s3 + $0x18] sm:$0xff] }
 0x6e2   :  { %3496 = vmatprep.subr.msk.bf16.mxu0 %vm3630_vm3, %v3494_v14 }
 0x6e3   :  { %3499 = vmatpush3.bf16.msk.msra.mxu0 %vm3630_vm3, %v3494_v14 }
 0x6e4   :  { %3364 = vmatprep.subr.msk.mxu0 %vm34_vm0, %v3059_v18 }
 0x6e6   :  { %3350 = vmatmul.mubr.msk.f32.vlgmr.msra.gmra.mrb[8].mxu0 %vm113_vm4, %v3034_v15 }
 0x6e7   :  { %3366 = vmatprep.mubr.msk.f32.mxu0 %vm27_vm1, %v3057_v19  ;;  %3365 = vmatpush3.msk.msra.mxu0 %vm34_vm0, %v3059_v18 }
 0x6ea   :  { %3367 = vmatmul.mubr.msk.f32.vlgmr.msra.gmra.mrb[10].mxu0 %vm27_vm1, %v3058_v24 }
 0x6eb   :  { %3373 = vmatprep.mubr.msk.f32.mxu0 %vm113_vm4, %v3055_v25 }
 0x7b9   :  { %v3351_v20 = vpop.f32.mrb[8].mxu0 }
 0x7ba   :  { %v1597_v21 = vpop.f32.mrb[9].mxu0 }
 0x7bb   :  { %v3500_v22 = vpack.c.bf16 %v3351_v20, %v1597_v21 }
 0x7bd   :  { %3502 = vmatprep.subr.msk.bf16.mxu1 %vm3630_vm3, %v3500_v22 }
 0x7be   :  { %3505 = vmatpush3.bf16.msk.msra.mxu1 %vm3630_vm3, %v3500_v22 }
 0x7bf   :  { %3376 = vmatprep.subr.msk.mxu1 %vm34_vm0, %v3070_v26 }
 0x7c1   :  { %3362 = vmatmul.mubr.msk.f32.vlgmr.msra.gmra.mrb[10].mxu1 %vm113_vm4, %v3045_v23 }
 0x7c2   :  { %3378 = vmatprep.mubr.msk.f32.mxu1 %vm27_vm1, %v3068_v27  ;;  %3377 = vmatpush3.msk.msra.mxu1 %vm34_vm0, %v3070_v26 }
 0x7c5   :  { %3379 = vmatmul.mubr.msk.f32.vlgmr.msra.gmra.mrb[12].mxu1 %vm27_vm1, %v3069_v32 }
 0x7c6   :  { %3385 = vmatprep.mubr.msk.f32.mxu1 %vm113_vm4, %v3066_v33 }
 0x894   :  { %v3363_v28 = vpop.f32.mrb[10].mxu1 }
 0x895   :  { %v1773_v29 = vpop.f32.mrb[11].mxu1 }
 0x896   :  { %v3506_v30 = vpack.c.bf16 %v3363_v28, %v1773_v29 }
 0x898   :  { %3508 = vmatprep.subr.msk.bf16.mxu0 %vm3630_vm3, %v3506_v30 }
 0x899   :  { %3511 = vmatpush3.bf16.msk.msra.mxu0 %vm3630_vm3, %v3506_v30 }
 0x89a   :  { %3388 = vmatprep.subr.msk.mxu0 %vm34_vm0, %v3081_v34 }
 0x89c   :  { %3374 = vmatmul.mubr.msk.f32.vlgmr.msra.gmra.mrb[10].mxu0 %vm113_vm4, %v3056_v31 }
 0x89d   :  { %3390 = vmatprep.mubr.msk.f32.mxu0 %vm27_vm1, %v3079_v35  ;;  %3389 = vmatpush3.msk.msra.mxu0 %vm34_vm0, %v3081_v34 }
 0x8a0   :  { %3391 = vmatmul.mubr.msk.f32.vlgmr.msra.gmra.mrb[12].mxu0 %vm27_vm1, %v3080_v40 }
 0x8a1   :  { %3397 = vmatprep.mubr.msk.f32.mxu0 %vm113_vm4, %v3077_v41 }
 0x96f   :  { %v3375_v36 = vpop.f32.mrb[10].mxu0 }
 0x970   :  { %v1949_v37 = vpop.f32.mrb[11].mxu0 }
 0x971   :  { %v3512_v38 = vpack.c.bf16 %v3375_v36, %v1949_v37 }
 0x973   :  { %3514 = vmatprep.subr.msk.bf16.mxu1 %vm3630_vm3, %v3512_v38 }
 0x974   :  { %3517 = vmatpush3.bf16.msk.msra.mxu1 %vm3630_vm3, %v3512_v38 }
 0x975   :  { %3400 = vmatprep.subr.msk.mxu1 %vm34_vm0, %v3092_v42 }
 0x977   :  { %3386 = vmatmul.mubr.msk.f32.vlgmr.msra.gmra.mrb[12].mxu1 %vm113_vm4, %v3067_v39 }
 0x978   :  { %3402 = vmatprep.mubr.msk.f32.mxu1 %vm27_vm1, %v3090_v43  ;;  %3401 = vmatpush3.msk.msra.mxu1 %vm34_vm0, %v3092_v42 }
 0x97b   :  { %3403 = vmatmul.mubr.msk.f32.vlgmr.msra.gmra.mrb[14].mxu1 %vm27_vm1, %v3091_v48 }
 0x97c   :  { %3409 = vmatprep.mubr.msk.f32.mxu1 %vm113_vm4, %v3088_v49 }
 0xa4a   :  { %v3387_v44 = vpop.f32.mrb[12].mxu1 }
 0xa4b   :  { %v2125_v45 = vpop.f32.mrb[13].mxu1 }
 0xa4c   :  { %v3518_v46 = vpack.c.bf16 %v3387_v44, %v2125_v45 }
 0xa4e   :  { %3520 = vmatprep.subr.msk.bf16.mxu0 %vm3630_vm3, %v3518_v46 }
 0xa4f   :  { %3523 = vmatpush3.bf16.msk.msra.mxu0 %vm3630_vm3, %v3518_v46 }
 0xa50   :  { %3412 = vmatprep.subr.msk.mxu0 %vm34_vm0, %v3103_v50 }
 0xa52   :  { %3398 = vmatmul.mubr.msk.f32.vlgmr.msra.gmra.mrb[12].mxu0 %vm113_vm4, %v3078_v47 }
 0xa53   :  { %3414 = vmatprep.mubr.msk.f32.mxu0 %vm27_vm1, %v3101_v51  ;;  %3413 = vmatpush3.msk.msra.mxu0 %vm34_vm0, %v3103_v50 }
 0xa56   :  { %3415 = vmatmul.mubr.msk.f32.vlgmr.msra.gmra.mrb[14].mxu0 %vm27_vm1, %v3102_v56 }
 0xa57   :  { %3421 = vmatprep.mubr.msk.f32.mxu0 %vm113_vm4, %v3099_v57 }
 0xb25   :  { %v3399_v52 = vpop.f32.mrb[12].mxu0 }
 0xb26   :  { %v2301_v53 = vpop.f32.mrb[13].mxu0 }
 0xb27   :  { %v3524_v54 = vpack.c.bf16 %v3399_v52, %v2301_v53 }
 0xb29   :  { %3526 = vmatprep.subr.msk.bf16.mxu1 %vm3630_vm3, %v3524_v54 }
 0xb2a   :  { %3529 = vmatpush3.bf16.msk.msra.mxu1 %vm3630_vm3, %v3524_v54 }
 0xb2b   :  { %3424 = vmatprep.subr.msk.mxu1 %vm34_vm0, %v3114_v58 }
 0xb2d   :  { %3410 = vmatmul.mubr.msk.f32.vlgmr.msra.gmra.mrb[14].mxu1 %vm113_vm4, %v3089_v55 }
 0xb2e   :  { %3426 = vmatprep.mubr.msk.f32.mxu1 %vm27_vm1, %v3112_v59  ;;  %3425 = vmatpush3.msk.msra.mxu1 %vm34_vm0, %v3114_v58 }
 0xb31   :  { %3427 = vmatmul.mubr.msk.f32.vlgmr.msra.gmra.mrb[16].mxu1 %vm27_vm1, %v3113_v0 }
 0xb32   :  { %3433 = vmatprep.mubr.msk.f32.mxu1 %vm113_vm4, %v3110_v1 }
 0xc00   :  { %v3411_v60 = vpop.f32.mrb[14].mxu1 }
 0xc01   :  { %v2477_v61 = vpop.f32.mrb[15].mxu1 }
 0xc02   :  { %v3530_v62 = vpack.c.bf16 %v3411_v60, %v2477_v61 }
 0xc04   :  { %3532 = vmatprep.subr.msk.bf16.mxu0 %vm3630_vm3, %v3530_v62 }
 0xc05   :  { %3535 = vmatpush3.bf16.msk.msra.mxu0 %vm3630_vm3, %v3530_v62 }
 0xc08   :  { %3422 = vmatmul.mubr.msk.f32.vlgmr.msra.gmra.mrb[14].mxu0 %vm113_vm4, %v3100_v63 }
 0xc09   :  { %3440 = vmatprep.mubr.msk.f32.mxu0 %vm113_vm4, %v2838_v7 }
 0xcdb   :  { %v3423_v2 = vpop.f32.mrb[14].mxu0 }
 0xcdc   :  { %v2653_v3 = vpop.f32.mrb[15].mxu0 }
 0xcdd   :  { %v3536_v4 = vpack.c.bf16 %v3423_v2, %v2653_v3 }
 0xcdf   :  { %3538 = vmatprep.subr.msk.bf16.mxu1 %vm3630_vm3, %v3536_v4 }
 0xce0   :  { %3541 = vmatpush3.bf16.msk.msra.mxu1 %vm3630_vm3, %v3536_v4 }
 0xce3   :  { %3434 = vmatmul.mubr.msk.f32.vlgmr.msra.gmra.mrb[16].mxu1 %vm113_vm4, %v3111_v6 }
 0xdb6   :  { %v3435_v8 = vpop.f32.mrb[16].mxu1 }
 0xdb7   :  { %v2829_v9 = vpop.f32.mrb[17].mxu1 }
 0xdb8   :  { %v3542_v10 = vpack.c.bf16 %v3435_v8, %v2829_v9 }
 0xdba   :  { %3544 = vmatprep.subr.msk.bf16.mxu0 %vm3630_vm3, %v3542_v10 }
 0xdbb   :  { %3547 = vmatpush3.bf16.msk.msra.mxu0 %vm3630_vm3, %v3542_v10 }
 0xdbe   :  { %3441 = vmatmul.mubr.msk.f32.vlgmr.msra.gmra.mrb[16].mxu0 %vm113_vm4, %v2839_v11 }
 0xdbf   :  { %3443 = vmatprep.mubr.msk.f32.mxu0 %vm113_vm4, %v2840_v12 }
 0xdc2   :  { %3444 = vmatmul.mubr.msk.f32.gmra.mrb[18].mxu0 %vm113_vm4, %v2841_v13 }
 0xe91   :  { %v3442_v5 = vpop.f32.mrb[16].mxu0 }
 0xe92   :  { %2943 = vst [vmem:[%s4060_s5 + $0x8] sm:$0xff] %v3442_v5  ;;  %v2923_v14 = vpop.f32.mrb[17].mxu0 }
 0xe93   :  { %2942 = vst [vmem:[%s4060_s5] sm:$0xff] %v2923_v14 }
 0xe95   :  { %v3445_v15 = vpop.f32.mrb[18].mxu0 }
 0xe96   :  { %2945 = vst [vmem:[%s4060_s5 + $0x18] sm:$0xff] %v3445_v15  ;;  %v2933_v16 = vpop.f32.mrb[19].mxu0 }
 0xe97   :  { %2944 = vst [vmem:[%s4060_s5 + $0x10] sm:$0xff] %v2933_v16 }

</bundles_post_ra>
